<compile_context>
chip_gen: v6e
topology: v6e:2x2x1
jax: 0.10.0
libtpu: 0.0.40
codegen_flags: <defaults>
</compile_context>

<pallas_src>
import jax
import jax.numpy as jnp
import numpy as np
from jax.experimental import pallas as pl
from jax.experimental.pallas import tpu as pltpu

_LANES = 128
_TILE_BUDGET_BYTES = 1 * 1024 * 1024  # ~1 MiB per input tile (pre double-buffering)


def _allreduce_kernel(x_ref, o_ref):
    # x_ref / o_ref: (R, TB, 128) tiles.  Each x_ref[i] is a densely packed
    # (TB, 128) slab, so the rank-sum is (R-1) elementwise VPU adds and the
    # replicated write-back is R unmasked lane-dense stores (no XLU ops).
    r = x_ref.shape[0]
    s = x_ref[0, :, :].astype(jnp.float32)
    for i in range(1, r):
        s = s + x_ref[i, :, :].astype(jnp.float32)
    s = s.astype(o_ref.dtype)
    for i in range(r):
        o_ref[i, :, :] = s


def pallas_all_reduce(x_stacked: jax.Array) -> jax.Array:
    """Simulated all_reduce(SUM) over the leading 'rank' axis.

    x_stacked: [R, B, C, H, W] -> [R, B, C, H, W], every rank = sum over ranks.
    """
    orig_shape = x_stacked.shape
    dtype = x_stacked.dtype
    itemsize = np.dtype(dtype).itemsize
    R = int(orig_shape[0])
    F = int(np.prod(orig_shape[1:]))

    xf = x_stacked.reshape(R, F)

    # Number of 128-lane blocks in the feature axis (pad up with zeros; zeros do
    # not change the sum).
    nb = -(-F // _LANES)

    # Tile size along the block axis: largest multiple of 8 whose input tile
    # stays within the per-tile budget, or the full (padded) extent if smaller.
    target_tb = max(8, (_TILE_BUDGET_BYTES // (R * _LANES * itemsize)) // 8 * 8)
    if nb <= target_tb:
        tb = nb                       # block == full (padded) dim -> always legal
    else:
        tb = target_tb                # multiple of 8 -> satisfies (8,128) tiling
    nb_pad = -(-nb // tb) * tb
    f_pad = nb_pad * _LANES

    if f_pad != F:
        xf = jnp.pad(xf, ((0, 0), (0, f_pad - F)))
    x3 = xf.reshape(R, nb_pad, _LANES)

    grid = (nb_pad // tb,)

    cost = pl.CostEstimate(
        flops=R * f_pad,                       # (R-1) adds per element, rounded up
        transcendentals=0,
        bytes_accessed=2 * R * f_pad * itemsize,  # read R*F + write R*F
    )

    out = pl.pallas_call(
        _allreduce_kernel,
        out_shape=jax.ShapeDtypeStruct((R, nb_pad, _LANES), dtype),
        grid_spec=pltpu.PrefetchScalarGridSpec(
            num_scalar_prefetch=0,
            grid=grid,
            in_specs=[pl.BlockSpec((R, tb, _LANES), lambda j: (0, j, 0))],
            out_specs=pl.BlockSpec((R, tb, _LANES), lambda j: (0, j, 0)),
        ),
        compiler_params=pltpu.CompilerParams(
            dimension_semantics=("parallel",),
            vmem_limit_bytes=32 * 1024 * 1024,
        ),
        cost_estimate=cost,
    )(x3)

    out = out.reshape(R, f_pad)
    if f_pad != F:
        out = out[:, :F]
    return out.reshape(orig_shape)


if __name__ == "__main__":
    key = jax.random.PRNGKey(0)

    # Simulated world size R=4, per-rank tensor [B, C, H, W] = [2, 4, 16, 16].
    R, B, C, H, W = 4, 2, 4, 16, 16
    x = jax.random.normal(key, (R, B, C, H, W), dtype=jnp.float32)
    y = jax.block_until_ready(pallas_all_reduce(x))
    ref = jnp.broadcast_to(jnp.sum(x, axis=0, keepdims=True), x.shape)
    np.testing.assert_allclose(np.asarray(y), np.asarray(ref), rtol=1e-6, atol=1e-6)
    assert y.shape == x.shape and y.dtype == x.dtype

    # Robustness check: odd feature size (not a multiple of 128) -> padded path.
    key2 = jax.random.PRNGKey(1)
    x2 = jax.random.normal(key2, (3, 2, 3, 14, 14), dtype=jnp.float32)
    y2 = jax.block_until_ready(pallas_all_reduce(x2))
    ref2 = jnp.broadcast_to(jnp.sum(x2, axis=0, keepdims=True), x2.shape)
    np.testing.assert_allclose(np.asarray(y2), np.asarray(ref2), rtol=1e-6, atol=1e-6)
    assert y2.shape == x2.shape and y2.dtype == x2.dtype

    print("KERNEL_OK")
</pallas_src>

<mosaic_0001>
module attributes {stable_mosaic.version = 11 : i64} {
  func.func @_allreduce_kernel(%arg0: i32, %arg1: memref<4x16x128xf32, #tpu.memory_space<vmem>>, %arg2: memref<4x16x128xf32, #tpu.memory_space<vmem>>) attributes {dimension_semantics = [#tpu.dimension_semantics<parallel>], iteration_bounds = array<i64: 1>, scalar_prefetch = 0 : i64, scratch_operands = 0 : i64, tpu.core_type = #tpu.core_type<tc>, window_params = [{transform_indices = @transform_0, window_bounds = array<i64: 4, 16, 128>}, {transform_indices = @transform_1, window_bounds = array<i64: 4, 16, 128>}]} {
    %c0 = arith.constant 0 : index
    %c0_0 = arith.constant 0 : index
    %c0_1 = arith.constant 0 : index
    %0 = vector.load %arg1[%c0, %c0_0, %c0_1] : memref<4x16x128xf32, #tpu.memory_space<vmem>>, vector<1x16x128xf32>
    %1 = vector.shape_cast %0 : vector<1x16x128xf32> to vector<16x128xf32>
    %c1 = arith.constant 1 : index
    %c0_2 = arith.constant 0 : index
    %c0_3 = arith.constant 0 : index
    %2 = vector.load %arg1[%c1, %c0_2, %c0_3] : memref<4x16x128xf32, #tpu.memory_space<vmem>>, vector<1x16x128xf32>
    %3 = vector.shape_cast %2 : vector<1x16x128xf32> to vector<16x128xf32>
    %4 = arith.addf %1, %3 : vector<16x128xf32>
    %c2 = arith.constant 2 : index
    %c0_4 = arith.constant 0 : index
    %c0_5 = arith.constant 0 : index
    %5 = vector.load %arg1[%c2, %c0_4, %c0_5] : memref<4x16x128xf32, #tpu.memory_space<vmem>>, vector<1x16x128xf32>
    %6 = vector.shape_cast %5 : vector<1x16x128xf32> to vector<16x128xf32>
    %7 = arith.addf %4, %6 : vector<16x128xf32>
    %c3 = arith.constant 3 : index
    %c0_6 = arith.constant 0 : index
    %c0_7 = arith.constant 0 : index
    %8 = vector.load %arg1[%c3, %c0_6, %c0_7] : memref<4x16x128xf32, #tpu.memory_space<vmem>>, vector<1x16x128xf32>
    %9 = vector.shape_cast %8 : vector<1x16x128xf32> to vector<16x128xf32>
    %10 = arith.addf %7, %9 : vector<16x128xf32>
    %c0_8 = arith.constant 0 : index
    %c0_9 = arith.constant 0 : index
    %c0_10 = arith.constant 0 : index
    %11 = vector.load %arg2[%c0_8, %c0_9, %c0_10] : memref<4x16x128xf32, #tpu.memory_space<vmem>>, vector<1x16x128xf32>
    %12 = vector.shape_cast %11 : vector<1x16x128xf32> to vector<16x128xf32>
    %13 = vector.shape_cast %10 : vector<16x128xf32> to vector<1x16x128xf32>
    tpu.vector_store %arg2[%c0_8, %c0_9, %c0_10], %13 {strides = array<i32>} : memref<4x16x128xf32, #tpu.memory_space<vmem>>, vector<1x16x128xf32>,
    %c1_11 = arith.constant 1 : index
    %c0_12 = arith.constant 0 : index
    %c0_13 = arith.constant 0 : index
    %14 = vector.load %arg2[%c1_11, %c0_12, %c0_13] : memref<4x16x128xf32, #tpu.memory_space<vmem>>, vector<1x16x128xf32>
    %15 = vector.shape_cast %14 : vector<1x16x128xf32> to vector<16x128xf32>
    %16 = vector.shape_cast %10 : vector<16x128xf32> to vector<1x16x128xf32>
    tpu.vector_store %arg2[%c1_11, %c0_12, %c0_13], %16 {strides = array<i32>} : memref<4x16x128xf32, #tpu.memory_space<vmem>>, vector<1x16x128xf32>,
    %c2_14 = arith.constant 2 : index
    %c0_15 = arith.constant 0 : index
    %c0_16 = arith.constant 0 : index
    %17 = vector.load %arg2[%c2_14, %c0_15, %c0_16] : memref<4x16x128xf32, #tpu.memory_space<vmem>>, vector<1x16x128xf32>
    %18 = vector.shape_cast %17 : vector<1x16x128xf32> to vector<16x128xf32>
    %19 = vector.shape_cast %10 : vector<16x128xf32> to vector<1x16x128xf32>
    tpu.vector_store %arg2[%c2_14, %c0_15, %c0_16], %19 {strides = array<i32>} : memref<4x16x128xf32, #tpu.memory_space<vmem>>, vector<1x16x128xf32>,
    %c3_17 = arith.constant 3 : index
    %c0_18 = arith.constant 0 : index
    %c0_19 = arith.constant 0 : index
    %20 = vector.load %arg2[%c3_17, %c0_18, %c0_19] : memref<4x16x128xf32, #tpu.memory_space<vmem>>, vector<1x16x128xf32>
    %21 = vector.shape_cast %20 : vector<1x16x128xf32> to vector<16x128xf32>
    %22 = vector.shape_cast %10 : vector<16x128xf32> to vector<1x16x128xf32>
    tpu.vector_store %arg2[%c3_17, %c0_18, %c0_19], %22 {strides = array<i32>} : memref<4x16x128xf32, #tpu.memory_space<vmem>>, vector<1x16x128xf32>,
    return
  }
  func.func @transform_0(%arg0: i32) -> (i32, i32, i32) {
    %c0_i32 = arith.constant 0 : i32
    %c0_i32_0 = arith.constant 0 : i32
    %c0_i32_1 = arith.constant 0 : i32
    return %c0_i32, %arg0, %c0_i32_0 : i32, i32, i32
  }
  func.func @transform_1(%arg0: i32) -> (i32, i32, i32) {
    %c0_i32 = arith.constant 0 : i32
    %c0_i32_0 = arith.constant 0 : i32
    %c0_i32_1 = arith.constant 0 : i32
    return %c0_i32, %arg0, %c0_i32_0 : i32, i32, i32
  }
}

</mosaic_0001>

<bundles_post_ra>
// kernel: tpu_custom_call.1
= control target key start
LH: loop header
LB: loop body
LE: loop exit
PB: predicated region body
PF: predicated region fallthrough
CT: control target
= control target key end

     0   :  { %6 = vsyncpa [#allocation3], 0  ;;  %s142_s0 = inlined_call_operand.hbm [shape: f32[4,16,128], index: 0, kind: input, shape index: {}]   ;;  %s143_s1 = inlined_call_operand.hbm [shape: f32[4,16,128], index: 1, kind: output, shape index: {}]  }
   0x1   :  { %7 = vsyncpa [#allocation4], 0  ;;  %s116_s6 = smov [#allocation2]  }
   0x2   :  { %s13_s7 = sshll.u32 %s116_s6, 4  ;;  %s14_s7 = int_to_ptr.vmem [resolvable:$true] %s13_s7 }
   0x3   :  { %s80_s8 = scalar_lea.vmem %s14_s7, 1024  ;;  %p85_p1 = scmp.lt.s32.totalorder %s14_s7, %s14_s7 }
   0x4   :  { %p81_p0 = scmp.ne.s32.totalorder %s14_s7, %s80_s8  ;;  %p86_p2 = scmp.lt.s32.totalorder %s80_s8, %s80_s8 }
   0x6   :  { %p87_p3 = por %p86_p2, %p85_p1 }
   0x8   :  { %p88_p4 = pnand %p87_p3, %p81_p0 }
   0xa   :  { %91 = shalt.err (!%p88_p4)
}
   0xb   :  { %s117_s9 = smov 128   ;;  %s118_s10 = smov 8  }
   0xc   :  { %19 = dma.hbm_to_vmem [thread:$0]  %s142_s0, 1024, %s14_s7, [#allocation3], %s117_s9, %s117_s9, %s118_s10  }
   0xd   :  { %112 = dma.done.wait [#allocation3], 1024  }
   0xe   :  { %113 = vsyncadd [#allocation3], 4294966272  ;;  %v23_v0 = vld [vmem:[#allocation2] sm:$0xff]  ;;  %v26_v1 = vld [vmem:[#allocation2 + $0x10] sm:$0xff]  ;;  %s119_s13 = smov [#allocation5]  }
   0xf   :  { %v31_v2 = vld [vmem:[#allocation2 + $0x20] sm:$0xff]  ;;  %v28_v3 = vadd.f32 %v26_v1, %v23_v0  ;;  %v24_v4 = vld [vmem:[#allocation2 + $0x8] sm:$0xff]  ;;  %v27_v5 = vld [vmem:[#allocation2 + $0x18] sm:$0xff]  ;;  %s56_s14 = sshll.u32 %s119_s13, 4  ;;  %s57_s14 = int_to_ptr.vmem [resolvable:$true] %s56_s14 }
  0x10   :  { %v36_v6 = vld [vmem:[#allocation2 + $0x30] sm:$0xff]  ;;  %v29_v7 = vadd.f32 %v27_v5, %v24_v4  ;;  %v32_v8 = vld [vmem:[#allocation2 + $0x28] sm:$0xff]  ;;  %v37_v10 = vld [vmem:[#allocation2 + $0x38] sm:$0xff]  ;;  %s92_s0 = scalar_lea.vmem %s57_s14, 1024  ;;  %p97_p6 = scmp.lt.s32.totalorder %s57_s14, %s57_s14 }
  0x11   :  { %v33_v9 = vadd.f32 %v31_v2, %v28_v3  ;;  %p93_p5 = scmp.ne.s32.totalorder %s57_s14, %s92_s0  ;;  %p98_p7 = scmp.lt.s32.totalorder %s92_s0, %s92_s0 }
  0x12   :  { %v34_v11 = vadd.f32 %v32_v8, %v29_v7 }
  0x13   :  { %v38_v12 = vadd.f32 %v36_v6, %v33_v9  ;;  %p99_p8 = por %p98_p7, %p97_p6 }
  0x14   :  { %v39_v13 = vadd.f32 %v37_v10, %v34_v11 }
  0x15   :  { %40 = vst [vmem:[#allocation5] sm:$0xff] %v38_v12  ;;  %43 = vst [vmem:[#allocation5 + $0x10] sm:$0xff] %v38_v12  ;;  %p100_p9 = pnand %p99_p8, %p93_p5 }
  0x16   :  { %46 = vst [vmem:[#allocation5 + $0x20] sm:$0xff] %v38_v12  ;;  %49 = vst [vmem:[#allocation5 + $0x30] sm:$0xff] %v38_v12 }
  0x17   :  { %41 = vst [vmem:[#allocation5 + $0x8] sm:$0xff] %v39_v13  ;;  %44 = vst [vmem:[#allocation5 + $0x18] sm:$0xff] %v39_v13 }
  0x18   :  { %47 = vst [vmem:[#allocation5 + $0x28] sm:$0xff] %v39_v13  ;;  %50 = vst [vmem:[#allocation5 + $0x38] sm:$0xff] %v39_v13 }
  0x19   :  { %103 = shalt.err (!%p100_p9)
}
  0x1a   :  { %62 = dma.vmem_to_hbm [thread:$0]  %s57_s14, 1024, %s143_s1, [#allocation4], %s117_s9, %s117_s9, %s118_s10  }
  0x1b   :  { %114 = dma.done.wait [#allocation4], 1024  }
  0x1c   :  { %115 = vsyncadd [#allocation4], 4294966272 }
  0x1d   :  { %66 = vsyncpa [#allocation3], 1 }
  0x1e   :  { %67 = vsyncpa [#allocation4], 1 }

</bundles_post_ra>
